<compile_context>
chip_gen: v7x
topology: tpu7x:2x2x1
jax: 0.10.0
libtpu: 0.0.40
codegen_flags: <defaults>
</compile_context>

<pallas_src>
import functools

import jax
import jax.numpy as jnp
from jax.experimental import pallas as pl
from jax.experimental.pallas import tpu as pltpu

MAX_NUM_OF_OPERATION = 2

# Per-block activation budget (bytes).  Pallas double-buffers each streamed
# input, so the x operand costs ~2x this at runtime; stays below the default
# scoped VMEM on every generation (16/32/32 MiB) and v7x's 64 MiB physical.
_X_BLOCK_BUDGET_BYTES = 8 * 1024 * 1024
_VMEM_LIMIT_BYTES = 48 * 1024 * 1024


def _pick_tile(dim, target, align):
    """Largest t <= target with t % align == 0 and dim % t == 0, else full dim."""
    if dim <= target:
        return dim
    t = (target // align) * align
    while t >= align:
        if dim % t == 0:
            return t
        t -= align
    return dim


def _cond_operation_kernel(x_ref, w_ref, b_ref, o_ref, acc_ref, *, inv_seq_len):
    # x_ref:   [TB, TS, H] activations (may be bf16 in production)
    # w_ref:   [OUT, H]    Linear weight, lane-dense on H (resident: constant block)
    # b_ref:   [1, OUT]    Linear bias (resident: constant block)
    # o_ref:   [TB, OUT]   scores
    # acc_ref: VMEM [TB, H] f32 running sum over the sequence axis
    s = pl.program_id(1)

    @pl.when(s == 0)
    def _():
        acc_ref[...] = jnp.zeros_like(acc_ref)

    # Partial sum over this sequence chunk, accumulated in f32.  The cast is
    # bounded by the (small) S tile, never the whole [B, S, H] tensor.
    acc_ref[...] += jnp.sum(x_ref[...].astype(jnp.float32), axis=1)

    @pl.when(s == pl.num_programs(1) - 1)
    def _():
        # base_net stub "cls": mean over S (1/S applied once per batch block).
        # TODO(synk): real base_net (BERT-style encoder) is external to this
        # module; replaced with a deterministic mean-pool "cls" extraction.
        cls = acc_ref[...] * jnp.float32(inv_seq_len)        # [TB, H]
        # Dropout(0.3): identity in eval mode.
        # TODO(synk): training-mode dropout would need pltpu.prng_seed /
        # pltpu.prng_random_bits and a keep-mask; not implemented here.
        w = w_ref[...].astype(jnp.float32)                   # [OUT, H]
        # OUT == 2 -> lane-sparse on the MXU; use VPU multiply + lane reduce.
        scores = jnp.sum(cls[:, None, :] * w[None, :, :], axis=-1)   # [TB, OUT]
        scores = scores + b_ref[...].astype(jnp.float32)              # bias bcast
        o_ref[...] = scores.astype(o_ref.dtype)


def cond_operation_net(x, weight, bias):
    """Forward pass.

    x:      [B, S, H] activations fed to the (stubbed) base_net.
    weight: [OUT, H]  Linear weight in PyTorch layout (OUT = 2).
    bias:   [OUT]     Linear bias.
    returns score [B, OUT] float32.
    """
    B, S, H = x.shape
    OUT = weight.shape[0]

    # --- tile selection -------------------------------------------------
    itemsize = jnp.dtype(x.dtype).itemsize
    elems_budget = _X_BLOCK_BUDGET_BYTES // itemsize

    # Prefer full-S blocks with the biggest batch tile that fits the budget
    # (bigger blocks -> better HBM streaming efficiency for this mem-bound op).
    if B <= 8:
        tb = B
    else:
        tb_target = max(8, elems_budget // max(1, S * H))
        tb = _pick_tile(B, min(tb_target, B), 8)

    ts_target = max(8, elems_budget // max(1, tb * H))
    ts = _pick_tile(S, ts_target, 8)

    grid = (B // tb, S // ts)

    bias_2d = bias.reshape(1, OUT)

    kernel = functools.partial(_cond_operation_kernel, inv_seq_len=1.0 / S)

    score = pl.pallas_call(
        kernel,
        out_shape=jax.ShapeDtypeStruct((B, OUT), jnp.float32),
        grid_spec=pltpu.PrefetchScalarGridSpec(
            num_scalar_prefetch=0,
            grid=grid,
            in_specs=[
                pl.BlockSpec((tb, ts, H), lambda b, s: (b, s, 0)),
                pl.BlockSpec((OUT, H), lambda b, s: (0, 0)),   # resident weight
                pl.BlockSpec((1, OUT), lambda b, s: (0, 0)),   # resident bias
            ],
            out_specs=pl.BlockSpec((tb, OUT), lambda b, s: (b, 0)),
            scratch_shapes=[pltpu.VMEM((tb, H), jnp.float32)],
        ),
        compiler_params=pltpu.CompilerParams(
            dimension_semantics=("parallel", "arbitrary"),
            vmem_limit_bytes=_VMEM_LIMIT_BYTES,
        ),
    )(x, weight, bias_2d)

    return score


def reference(x, weight, bias):
    cls = jnp.mean(x.astype(jnp.float32), axis=1)
    return cls @ weight.astype(jnp.float32).T + bias.astype(jnp.float32)


if __name__ == "__main__":
    # Small shapes consistent with the module (hidden=H, OUT=2).  Note: at this
    # size the op is dominated by fixed pallas_call overhead and would normally
    # be left to XLA fusion; the kernel structure targets production shapes.
    B, S, H = 2, 8, 32

    key = jax.random.PRNGKey(0)
    kx, kw, kb = jax.random.split(key, 3)

    x = jax.random.normal(kx, (B, S, H), dtype=jnp.float32)
    # Linear(hidden, 2) parameters in PyTorch layout [OUT, H].
    weight = jax.random.normal(kw, (MAX_NUM_OF_OPERATION, H), dtype=jnp.float32) * 0.02
    bias = jax.random.normal(kb, (MAX_NUM_OF_OPERATION,), dtype=jnp.float32) * 0.02

    score = cond_operation_net(x, weight, bias)
    score = jax.block_until_ready(score)

    ref = reference(x, weight, bias)
    assert score.shape == (B, MAX_NUM_OF_OPERATION)
    assert jnp.allclose(score, ref, atol=1e-5, rtol=1e-5), (score, ref)

    print("KERNEL_OK")
</pallas_src>

<mosaic_0001>
module attributes {stable_mosaic.version = 11 : i64} {
  func.func @_cond_operation_kernel(%arg0: i32, %arg1: i32, %arg2: memref<2x8x32xf32, #tpu.memory_space<vmem>>, %arg3: memref<2x32xf32, #tpu.memory_space<vmem>>, %arg4: memref<1x2xf32, #tpu.memory_space<vmem>>, %arg5: memref<2x2xf32, #tpu.memory_space<vmem>>, %arg6: memref<2x32xf32, #tpu.memory_space<vmem>>) attributes {dimension_semantics = [#tpu.dimension_semantics<parallel>, #tpu.dimension_semantics<arbitrary>], iteration_bounds = array<i64: 1, 1>, scalar_prefetch = 0 : i64, scratch_operands = 1 : i64, tpu.core_type = #tpu.core_type<tc>, window_params = [{transform_indices = @transform_0, window_bounds = array<i64: 2, 8, 32>}, {pipeline_mode = #tpu.pipeline_mode<synchronous>, transform_indices = @transform_1, window_bounds = array<i64: 2, 32>}, {pipeline_mode = #tpu.pipeline_mode<synchronous>, transform_indices = @transform_2, window_bounds = array<i64: 1, 2>}, {transform_indices = @transform_3, window_bounds = array<i64: 2, 2>}]} {
    %c0_i32 = arith.constant 0 : i32
    %0 = arith.cmpi eq, %arg1, %c0_i32 : i32
    %1 = arith.extui %0 : i1 to i32
    %c0_i32_0 = arith.constant 0 : i32
    %2 = arith.cmpi ne, %1, %c0_i32_0 : i32
    scf.if %2 {
      %cst_9 = arith.constant 0.000000e+00 : f32
      %11 = vector.broadcast %cst_9 : f32 to vector<2x32xf32>
      %c0_10 = arith.constant 0 : index
      %c0_11 = arith.constant 0 : index
      %12 = vector.load %arg6[%c0_10, %c0_11] : memref<2x32xf32, #tpu.memory_space<vmem>>, vector<2x32xf32>
      tpu.vector_store %arg6[%c0_10, %c0_11], %11 {strides = array<i32>} : memref<2x32xf32, #tpu.memory_space<vmem>>, vector<2x32xf32>,
    } else {
    }
    %c0 = arith.constant 0 : index
    %c0_1 = arith.constant 0 : index
    %3 = vector.load %arg6[%c0, %c0_1] : memref<2x32xf32, #tpu.memory_space<vmem>>, vector<2x32xf32>
    %c0_2 = arith.constant 0 : index
    %c0_3 = arith.constant 0 : index
    %c0_4 = arith.constant 0 : index
    %4 = vector.load %arg2[%c0_2, %c0_3, %c0_4] : memref<2x8x32xf32, #tpu.memory_space<vmem>>, vector<2x8x32xf32>
    %cst = arith.constant dense<0.000000e+00> : vector<2x32xf32>
    %5 = vector.multi_reduction <add>, %4, %cst [1] : vector<2x8x32xf32> to vector<2x32xf32>
    %6 = arith.addf %3, %5 : vector<2x32xf32>
    %c0_5 = arith.constant 0 : index
    %c0_6 = arith.constant 0 : index
    %7 = vector.load %arg6[%c0_5, %c0_6] : memref<2x32xf32, #tpu.memory_space<vmem>>, vector<2x32xf32>
    tpu.vector_store %arg6[%c0_5, %c0_6], %6 {strides = array<i32>} : memref<2x32xf32, #tpu.memory_space<vmem>>, vector<2x32xf32>,
    %c0_i32_7 = arith.constant 0 : i32
    %8 = arith.cmpi eq, %arg1, %c0_i32_7 : i32
    %9 = arith.extui %8 : i1 to i32
    %c0_i32_8 = arith.constant 0 : i32
    %10 = arith.cmpi ne, %9, %c0_i32_8 : i32
    scf.if %10 {
      %c0_9 = arith.constant 0 : index
      %c0_10 = arith.constant 0 : index
      %11 = vector.load %arg6[%c0_9, %c0_10] : memref<2x32xf32, #tpu.memory_space<vmem>>, vector<2x32xf32>
      %cst_11 = arith.constant 1.250000e-01 : f32
      %12 = vector.broadcast %cst_11 : f32 to vector<2x32xf32>
      %13 = arith.mulf %11, %12 : vector<2x32xf32>
      %c0_12 = arith.constant 0 : index
      %c0_13 = arith.constant 0 : index
      %14 = vector.load %arg3[%c0_12, %c0_13] : memref<2x32xf32, #tpu.memory_space<vmem>>, vector<2x32xf32>
      %15 = vector.shape_cast %13 : vector<2x32xf32> to vector<2x1x32xf32>
      %16 = vector.shape_cast %14 : vector<2x32xf32> to vector<1x2x32xf32>
      %17 = vector.broadcast %15 : vector<2x1x32xf32> to vector<2x2x32xf32>
      %18 = vector.broadcast %16 : vector<1x2x32xf32> to vector<2x2x32xf32>
      %19 = arith.mulf %17, %18 : vector<2x2x32xf32>
      %cst_14 = arith.constant dense<0.000000e+00> : vector<2x2xf32>
      %20 = vector.multi_reduction <add>, %19, %cst_14 [2] : vector<2x2x32xf32> to vector<2x2xf32>
      %c0_15 = arith.constant 0 : index
      %c0_16 = arith.constant 0 : index
      %21 = vector.load %arg4[%c0_15, %c0_16] : memref<1x2xf32, #tpu.memory_space<vmem>>, vector<1x2xf32>
      %22 = vector.broadcast %21 : vector<1x2xf32> to vector<2x2xf32>
      %23 = arith.addf %20, %22 : vector<2x2xf32>
      %c0_17 = arith.constant 0 : index
      %c0_18 = arith.constant 0 : index
      %24 = vector.load %arg5[%c0_17, %c0_18] : memref<2x2xf32, #tpu.memory_space<vmem>>, vector<2x2xf32>
      tpu.vector_store %arg5[%c0_17, %c0_18], %23 {strides = array<i32>} : memref<2x2xf32, #tpu.memory_space<vmem>>, vector<2x2xf32>,
    } else {
    }
    return
  }
  func.func @transform_0(%arg0: i32, %arg1: i32) -> (i32, i32, i32) {
    %c0_i32 = arith.constant 0 : i32
    %c0_i32_0 = arith.constant 0 : i32
    return %arg0, %arg1, %c0_i32 : i32, i32, i32
  }
  func.func @transform_1(%arg0: i32, %arg1: i32) -> (i32, i32) {
    %c0_i32 = arith.constant 0 : i32
    %c0_i32_0 = arith.constant 0 : i32
    %c0_i32_1 = arith.constant 0 : i32
    return %c0_i32, %c0_i32_0 : i32, i32
  }
  func.func @transform_2(%arg0: i32, %arg1: i32) -> (i32, i32) {
    %c0_i32 = arith.constant 0 : i32
    %c0_i32_0 = arith.constant 0 : i32
    %c0_i32_1 = arith.constant 0 : i32
    return %c0_i32, %c0_i32_0 : i32, i32
  }
  func.func @transform_3(%arg0: i32, %arg1: i32) -> (i32, i32) {
    %c0_i32 = arith.constant 0 : i32
    %c0_i32_0 = arith.constant 0 : i32
    return %arg0, %c0_i32 : i32, i32
  }
}

</mosaic_0001>

<bundles_post_ra>
// kernel: tpu_custom_call.1
= control target key start
LH: loop header
LB: loop body
LE: loop exit
PB: predicated region body
PF: predicated region fallthrough
CT: control target
= control target key end

     0   :  { %8 = vsyncpa [#allocation4], 0  ;;  %s278_s0 = inlined_call_operand.hbm [shape: f32[2,8,32], index: 0, kind: input, shape index: {}]   ;;  %s279_s1 = inlined_call_operand.vmem [shape: f32[2,32], index: 1, kind: input, shape index: {}]   ;;  %s280_s2 = inlined_call_operand.vmem [shape: f32[1,2], index: 2, kind: input, shape index: {}]   ;;  %s281_s3 = inlined_call_operand.hbm [shape: f32[2,2], index: 3, kind: output, shape index: {}]  }
   0x1   :  { %9 = vsyncpa [#allocation5], 0  ;;  %s215_s12 = smov [#allocation3]   ;;  %s167_s16 = scalar_lea.hbm %s278_s0, 256 }
   0x2   :  { %s15_s13 = sshll.u32 %s215_s12, 4  ;;  %p168_p0 = scmp.ne.s32.totalorder %s278_s0, %s167_s16  ;;  %s16_s13 = int_to_ptr.vmem [resolvable:$true] %s15_s13 }
   0x3   :  { %p171_p1 = scmp.lt.u32.totalorder %s167_s16, %s278_s0 }
   0x5   :  { %p173_p2 = pnand %p171_p1, %p168_p0 }
   0x7   :  { %176 = shalt.err (!%p173_p2)
}
   0x8   :  { %s177_s21 = scalar_lea.vmem %s16_s13, 256  ;;  %p182_p4 = scmp.lt.s32.totalorder %s16_s13, %s16_s13 }
   0x9   :  { %p178_p3 = scmp.ne.s32.totalorder %s16_s13, %s177_s21  ;;  %p183_p5 = scmp.lt.s32.totalorder %s177_s21, %s177_s21 }
   0xb   :  { %p184_p6 = por %p183_p5, %p182_p4 }
   0xd   :  { %p185_p7 = pnand %p184_p6, %p178_p3 }
   0xf   :  { %188 = shalt.err (!%p185_p7)
}
  0x10   :  { %s216_s22 = smov 128   ;;  %s217_s23 = smov 8  }
  0x11   :  { %21 = dma.hbm_to_vmem [thread:$0]  %s278_s0, 256, %s16_s13, [#allocation4], %s216_s22, %s216_s22, %s217_s23  }
  0x12   :  { %211 = dma.done.wait [#allocation4], 256  }
  0x13   :  { %212 = vsyncadd [#allocation4], 4294967040  ;;  %vm33_vm0 = vcmask 254976   ;;  %v218_v0 = vmov 0.0   ;;  %vm38_vm1 = vcmask 261120   ;;  %v36_v1 = vld [vmem:[#allocation3] sm:$0xff]  ;;  %v71_v23 = vlaneseq }
  0x14   :  { %34 = vst.msk [vmem:[#allocation2] sm:$0x3] %vm33_vm0, %v218_v0  ;;  %v37_v2 = vld [vmem:[#allocation3 + $0x8] sm:$0xff]  ;;  %v39_v3 = vsel %vm38_vm1, %v36_v1, 0.0  ;;  %v157_v5 = vld [vmem:[%s280_s2] ss:$0 sm:$0xff] }
  0x15   :  { %v46_v4 = vsel %vm38_vm1, %v37_v2, 0.0  ;;  %v40_v6 = vrot.slane %v39_v3, 4  ;;  %115 = vbcast.lane.b32.xlu1 %v157_v5, 256  ;;  %vm55_vm2 = vcmask 1041409   ;;  %v219_v21 = vmov 1966171168  }
  0x16   :  { %v47_v7 = vrot.slane %v46_v4, 4  ;;  %v69_v22 = vunpack.c.l.s4 %v219_v21  ;;  %v72_v25 = vshrl.u32 %v71_v23, 7  ;;  %v66_v33 = vld [vmem:[%s279_s1] sm:$0x3]  ;;  %v220_v41 = vmov 0   ;;  %s221_s1 = smov [#allocation6]  }
  0x17   :  { %v41_v8 = vadd.f32 %v40_v6, %v39_v3  ;;  %165 = vset.pattern.permute.xlu1 %v220_v41  ;;  %166 = vset.pattern.permute.xlu0 %v220_v41  ;;  %v129_v42 = vand.u32 127, %v71_v23  ;;  %s148_s28 = sshll.u32 %s221_s1, 4  ;;  %vm140_vm3 = vcmask 9216   ;;  %s149_s28 = int_to_ptr.vmem [resolvable:$true] %s148_s28 }
  0x18   :  { %v48_v9 = vadd.f32 %v47_v7, %v46_v4  ;;  %v70_v24 = vunpack.c.0.s8 %v69_v22  ;;  %v92_v30 = vsub.s32 0, %v72_v25  ;;  %s189_s29 = scalar_lea.vmem %s149_s28, 32  ;;  %p194_p9 = scmp.lt.s32.totalorder %s149_s28, %s149_s28 }
  0x19   :  { %v42_v10 = vrot.slane %v41_v8, 2  ;;  %v132_v43 = vsub.s32 %v129_v42, %v72_v25  ;;  %p190_p8 = scmp.ne.s32.totalorder %s149_s28, %s189_s29  ;;  %p195_p10 = scmp.lt.s32.totalorder %s189_s29, %s189_s29 }
  0x1a   :  { %v49_v11 = vrot.slane %v48_v9, 2  ;;  %v73_v26 = vsub.s32 %v70_v24, %v72_v25 }
  0x1b   :  { %v43_v12 = vadd.f32 %v42_v10, %v41_v8  ;;  %v35_v16 = vld [vmem:[#allocation2] sm:$0x3]  ;;  %p196_p11 = por %p195_p10, %p194_p9 }
  0x1c   :  { %v50_v13 = vadd.f32 %v49_v11, %v48_v9 }
  0x1d   :  { %v44_v14 = vrot.slane %v43_v12, 1  ;;  %p197_p12 = pnand %p196_p11, %p190_p8 }
  0x1e   :  { %v51_v15 = vrot.slane %v50_v13, 1 }
  0x1f   :  { %v45_v17 = vadd.f32 %v44_v14, %v43_v12 }
  0x20   :  { %v52_v18 = vadd.f32 %v51_v15, %v50_v13 }
  0x22   :  { %v56_v19 = vsel %vm55_vm2, %v52_v18, %v45_v17 }
  0x23   :  { %v58_v20 = vadd.f32 %v56_v19, %v35_v16 }
  0x25   :  { %60 = vst.msk [vmem:[#allocation2] sm:$0x3] %vm33_vm0, %v58_v20 }
  0x2c   :  { %v64_v27 = vld [vmem:[#allocation2] sm:$0x3] }
  0x2d   :  { %v65_v28 = vmul.f32 0.125, %v64_v27 }
  0x2f   :  { %v74_v29 = vrot.slane %v65_v28, %v73_v26 }
  0x31   :  { %v82_v31 = vrot.slane %v74_v29, %v73_v26  ;;  %v75_v32 = vcombine.high %v74_v29, %v74_v29 }
  0x33   :  { %v93_v34 = vrot.slane %v82_v31, %v92_v30  ;;  %v89_v35 = vrot.slane %v75_v32, %v73_v26 }
  0x35   :  { %v100_v36 = vmul.f32 %v93_v34, %v66_v33  ;;  %v97_v37 = vrot.slane %v89_v35, %v92_v30 }
  0x37   :  { %v102_v38 = vsel %vm33_vm0, %v100_v36, 0.0  ;;  %v101_v39 = vmul.f32 %v97_v37, %v66_v33 }
  0x38   :  { %103 = vadd.xlane.f32.xlu0 %v102_v38 }
  0x39   :  { %v105_v40 = vsel %vm33_vm0, %v101_v39, 0.0 }
  0x3c   :  { %106 = vadd.xlane.f32.xlu0 %v105_v40 }
  0x87   :  { %v116_v44 = vpop.permute.xlu1 %115 }
  0xc5   :  { %v104_v45 = vpop.xlane.xlu0 %103 }
  0xc6   :  { %v118_v46 = vadd.f32 %v116_v44, %v104_v45 }
  0xc8   :  { %123 = vperm.xlu1 %165, %v118_v46  }
  0xc9   :  { %v107_v47 = vpop.xlane.xlu0 %106 }
  0xca   :  { %v119_v48 = vadd.f32 %v116_v44, %v107_v47 }
  0xcc   :  { %126 = vperm.xlu0 %166, %v119_v48  }
 0x147   :  { %v124_v49 = vpop.permute.xlu1 %123 }
 0x148   :  { %v133_v51 = vrot.slane %v124_v49, %v132_v43 }
 0x14b   :  { %v127_v50 = vpop.permute.xlu0 %126 }
 0x14c   :  { %v137_v52 = vrot.slane %v127_v50, %v132_v43 }
 0x14e   :  { %v138_v53 = vsel %vm55_vm2, %v137_v52, %v133_v51 }
 0x14f   :  { %141 = vst.msk [vmem:[#allocation6] sm:$0x3] %vm140_vm3, %v138_v53 }
 0x150   :  { %200 = shalt.err (!%p197_p12)
}
 0x151   :  { %s201_s5 = scalar_lea.hbm %s281_s3, 32 }
 0x152   :  { %p202_p13 = scmp.ne.s32.totalorder %s281_s3, %s201_s5  ;;  %p205_p0 = scmp.lt.u32.totalorder %s201_s5, %s281_s3 }
 0x154   :  { %p207_p1 = pnand %p205_p0, %p202_p13 }
 0x156   :  { %210 = shalt.err (!%p207_p1)
}
 0x157   :  { %151 = dma.vmem_to_hbm [thread:$0]  %s149_s28, 32, %s281_s3, [#allocation5]  }
 0x158   :  { %213 = dma.done.wait [#allocation5], 32  }
 0x159   :  { %214 = vsyncadd [#allocation5], 4294967264 }
 0x15a   :  { %155 = vsyncpa [#allocation4], 1 }
 0x15b   :  { %156 = vsyncpa [#allocation5], 1 }

</bundles_post_ra>
